<compile_context>
chip_gen: v6e
topology: v6e:2x2x1
jax: 0.10.0
libtpu: 0.0.40
codegen_flags: <defaults>
</compile_context>

<pallas_src>
import functools
import math

import jax
import jax.numpy as jnp
from jax.experimental import pallas as pl
from jax.experimental.pallas import tpu as pltpu

_NORM_EPS = 1e-12   # eps of F.normalize
_CLIP_EPS = 1e-7    # clamp eps of the reference module


def _round_up(x, m):
    return ((x + m - 1) // m) * m


def _vmem_budget_bytes():
    """Per-core VMEM budget with headroom (v5e/v6e: 128 MiB, v7x: 64 MiB)."""
    phys = 64 << 20                       # conservative default (v7x per-TC)
    try:
        info = pltpu.get_tpu_info()
        cap = getattr(info, "vmem_capacity_bytes", None)
        if cap:
            phys = int(cap)
    except Exception:
        pass
    return min(int(phys) * 3 // 4, 100 << 20)


# ----------------------------------------------------------------------------
# Kernel: one class tile, all (padded) batch rows.
#   feat_ref : [B_pad, F]      mxu_dtype, rows already L2-normalized
#   label_ref: [B_pad, 1]      int32 (-1 on padded rows)
#   w_ref    : [TILE_C, F]     classifier-weight tile (f32 or bf16 shadow)
#   out_ref  : [B_pad, TILE_C] logits tile (lane-dense store)
# ----------------------------------------------------------------------------
def _arc_margin_kernel(feat_ref, label_ref, w_ref, out_ref, *,
                       tile_c, s, cos_m, sin_m, mxu_dtype):
    c_tile = pl.program_id(0)

    # F.normalize(weight, dim=1) for this tile, in f32 (rsqrt -> EUP slot).
    w = w_ref[...].astype(jnp.float32)
    wn = w * jax.lax.rsqrt(
        jnp.maximum(jnp.sum(w * w, axis=-1, keepdims=True),
                    _NORM_EPS * _NORM_EPS))

    # cosine = feat_n @ weight_n.T on the MXU with f32 accumulation.
    cosine = jax.lax.dot_general(
        feat_ref[...], wn.astype(mxu_dtype),
        (((1,), (1,)), ((), ())),
        preferred_element_type=jnp.float32)               # [B_pad, TILE_C]

    # one_hot "scatter" rebuilt against the GLOBAL class index of this tile.
    gidx = (jax.lax.broadcasted_iota(jnp.int32, cosine.shape, 1)
            + c_tile * tile_c)
    hit = gidx == label_ref[...]                          # [B_pad, TILE_C]

    # cos(theta + m) only for the label column of each row ([B_pad, 1]);
    # acos(theta) in [0, pi] => sin(theta) = sqrt(1 - c^2) >= 0, no acos.
    label_cos = jnp.sum(jnp.where(hit, cosine, 0.0), axis=-1, keepdims=True)
    c = jnp.clip(label_cos, -1.0 + _CLIP_EPS, 1.0 - _CLIP_EPS)
    target = c * cos_m - jnp.sqrt(1.0 - c * c) * sin_m

    out_ref[...] = (s * jnp.where(hit, target, cosine)).astype(out_ref.dtype)


# ----------------------------------------------------------------------------
# Wrapper: hoist feature normalization, tile over classes, no weight pad,
# no output slice.
# ----------------------------------------------------------------------------
def arc_margin_forward(x, label, weight, *, s=30.0, m=0.5,
                       tile_c=None, mxu_dtype=jnp.bfloat16,
                       out_dtype=jnp.float32):
    """ArcMarginProduct.forward(input, label) -> logits [B, num_classes]."""
    B, F_dim = x.shape
    C, Fw = weight.shape
    assert Fw == F_dim, "weight must be [num_classes, in_features]"

    w_bytes = jnp.dtype(weight.dtype).itemsize
    out_bytes = jnp.dtype(out_dtype).itemsize
    mxu_bytes = jnp.dtype(mxu_dtype).itemsize

    # Batch rows padded to full MXU sublane groups (16 for bf16, 8 for f32).
    b_mult = 16 if mxu_bytes == 2 else 8
    B_pad = _round_up(max(B, b_mult), b_mult)
    C_ceil = max(128, _round_up(C, 128))

    budget = _vmem_budget_bytes()
    if tile_c is None:
        # 2x double-buffered weight tiles + 2x output tiles + resident
        # feature/label blocks must fit the per-generation VMEM budget.
        fixed = 2 * B_pad * F_dim * mxu_bytes + 2 * B_pad * 4 + (2 << 20)
        per_c = 2 * F_dim * w_bytes + 2 * B_pad * out_bytes
        tile_c = max(128, ((budget - fixed) // per_c // 128) * 128)
        tile_c = min(tile_c, 8192, C_ceil)
        # Prefer >= 2 class tiles so both v7x TensorCores stream weight DMAs.
        if tile_c >= C_ceil and C_ceil >= 256:
            tile_c = _round_up(pl.cdiv(C_ceil, 2), 128)
    else:
        tile_c = max(128, (min(int(tile_c), C_ceil) // 128) * 128)

    n_tiles = pl.cdiv(C, tile_c)

    # Tiny [B, F] pre-pass, hoisted out of the per-tile body:
    # F.normalize(input, dim=1) + cast to the MXU operand dtype + batch pad.
    xf = x.astype(jnp.float32)
    xn = xf * jax.lax.rsqrt(
        jnp.maximum(jnp.sum(xf * xf, axis=-1, keepdims=True),
                    _NORM_EPS * _NORM_EPS))
    feat = jnp.zeros((B_pad, F_dim), mxu_dtype).at[:B].set(xn.astype(mxu_dtype))
    lab = jnp.full((B_pad, 1), -1, jnp.int32).at[:B, 0].set(
        label.astype(jnp.int32))

    kernel = functools.partial(
        _arc_margin_kernel, tile_c=tile_c, s=float(s),
        cos_m=float(math.cos(m)), sin_m=float(math.sin(m)),
        mxu_dtype=mxu_dtype)

    cost = pl.CostEstimate(
        flops=2 * B_pad * F_dim * n_tiles * tile_c,
        transcendentals=B_pad * (n_tiles + 1) + n_tiles * tile_c,
        bytes_accessed=(C * F_dim * w_bytes + B * C * out_bytes
                        + B_pad * F_dim * mxu_bytes + B_pad * 4))

    # Output is emitted at its exact [B, C] shape: out-of-bounds portions of
    # the (B_pad, tile_c) blocks (padded batch rows / ragged last class tile)
    # are dropped by the pipeline, so no slicing copy is needed.
    out = pl.pallas_call(
        kernel,
        out_shape=jax.ShapeDtypeStruct((B, C), out_dtype),
        grid_spec=pltpu.PrefetchScalarGridSpec(
            num_scalar_prefetch=0,
            grid=(n_tiles,),
            in_specs=[
                pl.BlockSpec((B_pad, F_dim), lambda c: (0, 0)),   # features
                pl.BlockSpec((B_pad, 1), lambda c: (0, 0)),       # labels
                pl.BlockSpec((tile_c, F_dim), lambda c: (c, 0)),  # weight tile
            ],
            out_specs=pl.BlockSpec((B_pad, tile_c), lambda c: (0, c)),
        ),
        compiler_params=pltpu.CompilerParams(
            dimension_semantics=("parallel",),    # megacore sharding on v7x
            vmem_limit_bytes=budget),
        cost_estimate=cost,
    )(feat, lab, weight)

    return out


# ----------------------------------------------------------------------------
# Pure-JAX reference (mirrors the PyTorch module) for sanity checks.
# ----------------------------------------------------------------------------
def arc_margin_reference(x, label, weight, s=30.0, m=0.5):
    xn = x / jnp.maximum(jnp.linalg.norm(x, axis=1, keepdims=True), _NORM_EPS)
    wn = weight / jnp.maximum(jnp.linalg.norm(weight, axis=1, keepdims=True),
                              _NORM_EPS)
    cosine = xn @ wn.T
    theta = jnp.arccos(jnp.clip(cosine, -1.0 + _CLIP_EPS, 1.0 - _CLIP_EPS))
    target_logit = jnp.cos(theta + m)
    one_hot = jax.nn.one_hot(label, weight.shape[0], dtype=cosine.dtype)
    return s * (one_hot * target_logit + (1.0 - one_hot) * cosine)


if __name__ == "__main__":
    # --- Case 1: tiny module-consistent shapes -------------------------------
    B, F_DIM, C = 2, 32, 16
    kx, kl, kw = jax.random.split(jax.random.PRNGKey(0), 3)
    x = jax.random.normal(kx, (B, F_DIM), jnp.float32)
    label = jax.random.randint(kl, (B,), 0, C, jnp.int32)
    bound = math.sqrt(6.0 / (F_DIM + C))          # nn.init.xavier_uniform_
    weight = jax.random.uniform(kw, (C, F_DIM), jnp.float32,
                                minval=-bound, maxval=bound)

    ref = arc_margin_reference(x, label, weight)

    out = arc_margin_forward(x, label, weight)          # bf16 MXU operands
    jax.block_until_ready(out)
    assert out.shape == (B, C)
    assert bool(jnp.all(jnp.isfinite(out)))
    assert jnp.allclose(out, ref, atol=0.5), "bf16 path mismatch"

    out_f32 = arc_margin_forward(x, label, weight, mxu_dtype=jnp.float32)
    jax.block_until_ready(out_f32)
    assert out_f32.shape == (B, C)
    assert jnp.allclose(out_f32, ref, atol=5e-2), "f32 path mismatch"

    # --- Case 2: unaligned B / C, multiple class tiles, ragged last tile -----
    B2, F2, C2 = 5, 64, 300
    kx2, kl2, kw2 = jax.random.split(jax.random.PRNGKey(1), 3)
    x2 = jax.random.normal(kx2, (B2, F2), jnp.float32)
    label2 = jax.random.randint(kl2, (B2,), 0, C2, jnp.int32)
    bound2 = math.sqrt(6.0 / (F2 + C2))
    weight2 = jax.random.uniform(kw2, (C2, F2), jnp.float32,
                                 minval=-bound2, maxval=bound2)
    ref2 = arc_margin_reference(x2, label2, weight2)

    out2 = arc_margin_forward(x2, label2, weight2, tile_c=128)
    jax.block_until_ready(out2)
    assert out2.shape == (B2, C2)
    assert bool(jnp.all(jnp.isfinite(out2)))
    assert jnp.allclose(out2, ref2, atol=0.5), "ragged-tile path mismatch"

    # bf16 weight shadow (halves the dominant HBM weight stream).
    out2_bf16w = arc_margin_forward(x2, label2, weight2.astype(jnp.bfloat16),
                                    tile_c=128)
    jax.block_until_ready(out2_bf16w)
    assert jnp.allclose(out2_bf16w, ref2, atol=0.8), "bf16-weight path mismatch"

    print("KERNEL_OK")
</pallas_src>

<mosaic_0001>
module attributes {stable_mosaic.version = 11 : i64} {
  func.func @_arc_margin_kernel(%arg0: i32, %arg1: memref<16x32xbf16, #tpu.memory_space<vmem>>, %arg2: memref<16x1xi32, #tpu.memory_space<vmem>>, %arg3: memref<128x32xf32, #tpu.memory_space<vmem>>, %arg4: memref<16x128xf32, #tpu.memory_space<vmem>>) attributes {dimension_semantics = [#tpu.dimension_semantics<parallel>], iteration_bounds = array<i64: 1>, scalar_prefetch = 0 : i64, scratch_operands = 0 : i64, tpu.core_type = #tpu.core_type<tc>, window_params = [{pipeline_mode = #tpu.pipeline_mode<synchronous>, transform_indices = @transform_0, window_bounds = array<i64: 16, 32>}, {pipeline_mode = #tpu.pipeline_mode<synchronous>, transform_indices = @transform_1, window_bounds = array<i64: 16, 1>}, {transform_indices = @transform_2, window_bounds = array<i64: 128, 32>}, {transform_indices = @transform_3, window_bounds = array<i64: 16, 128>}]} {
    %c0 = arith.constant 0 : index
    %c0_0 = arith.constant 0 : index
    %0 = vector.load %arg3[%c0, %c0_0] : memref<128x32xf32, #tpu.memory_space<vmem>>, vector<128x32xf32>
    %1 = arith.mulf %0, %0 : vector<128x32xf32>
    %cst = arith.constant dense<0.000000e+00> : vector<128xf32>
    %2 = vector.multi_reduction <add>, %1, %cst [1] : vector<128x32xf32> to vector<128xf32>
    %3 = vector.shape_cast %2 : vector<128xf32> to vector<128x1xf32>
    %cst_1 = arith.constant 1.000000e-24 : f32
    %4 = vector.broadcast %cst_1 : f32 to vector<128x1xf32>
    %5 = arith.maximumf %3, %4 : vector<128x1xf32>
    %6 = math.rsqrt %5 : vector<128x1xf32>
    %7 = vector.broadcast %6 : vector<128x1xf32> to vector<128x32xf32>
    %8 = arith.mulf %0, %7 : vector<128x32xf32>
    %c0_2 = arith.constant 0 : index
    %c0_3 = arith.constant 0 : index
    %9 = vector.load %arg1[%c0_2, %c0_3] : memref<16x32xbf16, #tpu.memory_space<vmem>>, vector<16x32xbf16>
    %10 = arith.truncf %8 : vector<128x32xf32> to vector<128x32xbf16>
    %cst_4 = arith.constant dense<0.000000e+00> : vector<16x128xf32>
    %11 = tpu.matmul %9, %10, %cst_4 {dimension_numbers = #tpu.dot_dimension_numbers<[1], [1], [0], [0], [0, 0, 1, 0], [], []>} : vector<16x32xbf16>, vector<128x32xbf16>, vector<16x128xf32> -> vector<16x128xf32>
    %12 = tpu.iota {dimensions = array<i32: 1>} : vector<16x128xi32>
    %c128_i32 = arith.constant 128 : i32
    %13 = arith.muli %arg0, %c128_i32 : i32
    %14 = vector.broadcast %13 : i32 to vector<16x128xi32>
    %15 = arith.addi %12, %14 : vector<16x128xi32>
    %c0_5 = arith.constant 0 : index
    %c0_6 = arith.constant 0 : index
    %16 = vector.load %arg2[%c0_5, %c0_6] : memref<16x1xi32, #tpu.memory_space<vmem>>, vector<16x1xi32>
    %17 = vector.broadcast %16 : vector<16x1xi32> to vector<16x128xi32>
    %18 = arith.cmpi eq, %15, %17 : vector<16x128xi32>
    %cst_7 = arith.constant 0.000000e+00 : f32
    %19 = vector.broadcast %cst_7 : f32 to vector<16x128xf32>
    %20 = arith.select %18, %11, %19 : vector<16x128xi1>, vector<16x128xf32>
    %cst_8 = arith.constant dense<0.000000e+00> : vector<16xf32>
    %21 = vector.multi_reduction <add>, %20, %cst_8 [1] : vector<16x128xf32> to vector<16xf32>
    %22 = vector.shape_cast %21 : vector<16xf32> to vector<16x1xf32>
    %cst_9 = arith.constant -0.99999988 : f32
    %cst_10 = arith.constant 0.99999988 : f32
    %23 = vector.broadcast %cst_9 : f32 to vector<16x1xf32>
    %24 = arith.maximumf %23, %22 : vector<16x1xf32>
    %25 = vector.broadcast %cst_10 : f32 to vector<16x1xf32>
    %26 = arith.minimumf %25, %24 : vector<16x1xf32>
    %cst_11 = arith.constant 0.87758255 : f32
    %27 = vector.broadcast %cst_11 : f32 to vector<16x1xf32>
    %28 = arith.mulf %26, %27 : vector<16x1xf32>
    %29 = arith.mulf %26, %26 : vector<16x1xf32>
    %cst_12 = arith.constant 1.000000e+00 : f32
    %30 = vector.broadcast %cst_12 : f32 to vector<16x1xf32>
    %31 = arith.subf %30, %29 : vector<16x1xf32>
    %32 = math.sqrt %31 : vector<16x1xf32>
    %cst_13 = arith.constant 0.47942555 : f32
    %33 = vector.broadcast %cst_13 : f32 to vector<16x1xf32>
    %34 = arith.mulf %32, %33 : vector<16x1xf32>
    %35 = arith.subf %28, %34 : vector<16x1xf32>
    %36 = vector.shape_cast %35 : vector<16x1xf32> to vector<16x1xf32>
    %37 = vector.broadcast %36 : vector<16x1xf32> to vector<16x128xf32>
    %38 = arith.select %18, %37, %11 : vector<16x128xi1>, vector<16x128xf32>
    %cst_14 = arith.constant 3.000000e+01 : f32
    %39 = vector.broadcast %cst_14 : f32 to vector<16x128xf32>
    %40 = arith.mulf %39, %38 : vector<16x128xf32>
    %c0_15 = arith.constant 0 : index
    %c0_16 = arith.constant 0 : index
    %41 = vector.load %arg4[%c0_15, %c0_16] : memref<16x128xf32, #tpu.memory_space<vmem>>, vector<16x128xf32>
    tpu.vector_store %arg4[%c0_15, %c0_16], %40 {strides = array<i32>} : memref<16x128xf32, #tpu.memory_space<vmem>>, vector<16x128xf32>,
    return
  }
  func.func @transform_0(%arg0: i32) -> (i32, i32) {
    %c0_i32 = arith.constant 0 : i32
    %c0_i32_0 = arith.constant 0 : i32
    %c0_i32_1 = arith.constant 0 : i32
    return %c0_i32, %c0_i32_0 : i32, i32
  }
  func.func @transform_1(%arg0: i32) -> (i32, i32) {
    %c0_i32 = arith.constant 0 : i32
    %c0_i32_0 = arith.constant 0 : i32
    %c0_i32_1 = arith.constant 0 : i32
    return %c0_i32, %c0_i32_0 : i32, i32
  }
  func.func @transform_2(%arg0: i32) -> (i32, i32) {
    %c0_i32 = arith.constant 0 : i32
    %c0_i32_0 = arith.constant 0 : i32
    return %arg0, %c0_i32 : i32, i32
  }
  func.func @transform_3(%arg0: i32) -> (i32, i32) {
    %c0_i32 = arith.constant 0 : i32
    %c0_i32_0 = arith.constant 0 : i32
    return %c0_i32, %arg0 : i32, i32
  }
}

</mosaic_0001>

<bundles_post_ra>
// kernel: tpu_custom_call.1
= control target key start
LH: loop header
LB: loop body
LE: loop exit
PB: predicated region body
PF: predicated region fallthrough
CT: control target
= control target key end

     0   :  { %8 = vsyncpa [#allocation3], 0  ;;  %s646_s0 = inlined_call_operand.hbm [shape: bf16[16,32], index: 0, kind: input, shape index: {}]   ;;  %s647_s1 = inlined_call_operand.vmem [shape: s32[16,1], index: 1, kind: input, shape index: {}]   ;;  %s648_s2 = inlined_call_operand.vmem [shape: f32[16,32], index: 2, kind: input, shape index: {}]   ;;  %s649_s3 = inlined_call_operand.hbm [shape: f32[2,16], index: 3, kind: output, shape index: {}]  }
   0x1   :  { %9 = vsyncpa [#allocation4], 0  ;;  %s439_s12 = smov [#allocation2]  }
   0x2   :  { %s15_s13 = sshll.u32 %s439_s12, 4  ;;  %s16_s13 = int_to_ptr.vmem [resolvable:$true] %s15_s13 }
   0x3   :  { %s403_s14 = scalar_lea.vmem %s16_s13, 128  ;;  %p408_p1 = scmp.lt.s32.totalorder %s16_s13, %s16_s13 }
   0x4   :  { %p404_p0 = scmp.ne.s32.totalorder %s16_s13, %s403_s14  ;;  %p409_p2 = scmp.lt.s32.totalorder %s403_s14, %s403_s14 }
   0x6   :  { %p410_p3 = por %p409_p2, %p408_p1 }
   0x8   :  { %p411_p4 = pnand %p410_p3, %p404_p0 }
   0xa   :  { %414 = shalt.err (!%p411_p4)
}
   0xb   :  { %s440_s15 = smov 64   ;;  %s441_s16 = smov 4  }
   0xc   :  { %21 = dma.hbm_to_vmem [thread:$0]  %s646_s0, 128, %s16_s13, [#allocation3], %s440_s15, %s440_s15, %s441_s16  }
   0xd   :  { %435 = dma.done.wait [#allocation3], 128  }
   0xe   :  { %436 = vsyncadd [#allocation3], 4294967168  ;;  %v474_v0 = vld [vmem:[%s648_s2 + $0x70] sm:$0xff]  ;;  %vm62_vm0 = vcmask 261120   ;;  %v479_v1 = vld [vmem:[%s648_s2 + $0x78] sm:$0xff]  ;;  %v442_v46 = vmov 0.0  }
   0xf   :  { %v484_v2 = vld [vmem:[%s648_s2 + $0x60] sm:$0xff]  ;;  %v60_v3 = vmul.f32 %v474_v0, %v474_v0  ;;  %v61_v4 = vmul.f32 %v479_v1, %v479_v1  ;;  %v495_v6 = vld [vmem:[%s648_s2 + $0x68] sm:$0xff]  ;;  %v502_v8 = vld [vmem:[%s648_s2 + $0x58] sm:$0xff]  ;;  %327 = vmatprep.subr.bf16.mxu0 %v442_v46  ;;  %vm443_vm1 = vmmov 0   ;;  %v444_v51 = vmov 0  }
  0x10   :  { %v58_v5 = vmul.f32 %v484_v2, %v484_v2  ;;  %v59_v7 = vmul.f32 %v495_v6, %v495_v6  ;;  %v507_v9 = vld [vmem:[%s648_s2 + $0x50] sm:$0xff]  ;;  %v57_v14 = vmul.f32 %v502_v8, %v502_v8  ;;  %v520_v16 = vld [vmem:[%s648_s2 + $0x48] sm:$0xff]  ;;  %v525_v17 = vld [vmem:[%s648_s2 + $0x40] sm:$0xff]  ;;  %343 = vmatprep.mubr.msk.bf16.mxu0 %vm443_vm1, %v442_v46  ;;  %356 = vset.pattern.permute.xlu0 %v444_v51 }
  0x11   :  { %v105_v10 = vsel %vm62_vm0, %v60_v3, 0.0  ;;  %v108_v12 = vsel %vm62_vm0, %v61_v4, 0.0  ;;  %v56_v15 = vmul.f32 %v507_v9, %v507_v9  ;;  %v55_v20 = vmul.f32 %v520_v16, %v520_v16  ;;  %v536_v22 = vld [vmem:[%s648_s2 + $0x38] sm:$0xff]  ;;  %v541_v23 = vld [vmem:[%s648_s2 + $0x30] sm:$0xff]  ;;  %v552_v28 = vld [vmem:[%s648_s2 + $0x28] sm:$0xff]  ;;  %357 = vset.pattern.permute.xlu1 %v444_v51 }
  0x12   :  { %v99_v11 = vsel %vm62_vm0, %v58_v5, 0.0  ;;  %106 = vadd.xlane.f32.xlu0 %v105_v10  ;;  %v102_v13 = vsel %vm62_vm0, %v59_v7, 0.0  ;;  %v96_v18 = vsel %vm62_vm0, %v57_v14, 0.0  ;;  %v54_v21 = vmul.f32 %v525_v17, %v525_v17  ;;  %v557_v29 = vld [vmem:[%s648_s2 + $0x20] sm:$0xff]  ;;  %v568_v34 = vld [vmem:[%s648_s2 + $0x18] sm:$0xff]  ;;  %v573_v35 = vld [vmem:[%s648_s2 + $0x10] sm:$0xff] }
  0x13   :  { %100 = vadd.xlane.f32.xlu1 %v99_v11  ;;  %v93_v19 = vsel %vm62_vm0, %v56_v15, 0.0  ;;  %v90_v24 = vsel %vm62_vm0, %v55_v20, 0.0  ;;  %v53_v26 = vmul.f32 %v536_v22, %v536_v22  ;;  %v52_v27 = vmul.f32 %v541_v23, %v541_v23  ;;  %v584_v40 = vld [vmem:[%s648_s2 + $0x8] sm:$0xff]  ;;  %v589_v41 = vld [vmem:[%s648_s2] sm:$0xff] }
  0x14   :  { %v87_v25 = vsel %vm62_vm0, %v54_v21, 0.0  ;;  %v51_v32 = vmul.f32 %v552_v28, %v552_v28  ;;  %v50_v33 = vmul.f32 %v557_v29, %v557_v29  ;;  %v49_v38 = vmul.f32 %v568_v34, %v568_v34  ;;  %v247_v49 = vld [vmem:[%s647_s1] sm:$0xff]  ;;  %v248_v50 = vld [vmem:[%s647_s1 + $0x8] sm:$0xff] }
  0x15   :  { %v84_v30 = vsel %vm62_vm0, %v53_v26, 0.0  ;;  %v81_v31 = vsel %vm62_vm0, %v52_v27, 0.0  ;;  %v48_v39 = vmul.f32 %v573_v35, %v573_v35  ;;  %v47_v42 = vmul.f32 %v584_v40, %v584_v40 }
  0x16   :  { %109 = vadd.xlane.f32.xlu0 %v108_v12  ;;  %v78_v36 = vsel %vm62_vm0, %v51_v32, 0.0  ;;  %v75_v37 = vsel %vm62_vm0, %v50_v33, 0.0  ;;  %v72_v43 = vsel %vm62_vm0, %v49_v38, 0.0  ;;  %v46_v45 = vmul.f32 %v589_v41, %v589_v41 }
  0x17   :  { %103 = vadd.xlane.f32.xlu1 %v102_v13  ;;  %v69_v44 = vsel %vm62_vm0, %v48_v39, 0.0  ;;  %v66_v47 = vsel %vm62_vm0, %v47_v42, 0.0 }
  0x18   :  { %v63_v48 = vsel %vm62_vm0, %v46_v45, 0.0 }
  0x1a   :  { %94 = vadd.xlane.f32.xlu0 %v93_v19 }
  0x1b   :  { %97 = vadd.xlane.f32.xlu1 %v96_v18 }
  0x1e   :  { %88 = vadd.xlane.f32.xlu0 %v87_v25 }
  0x1f   :  { %91 = vadd.xlane.f32.xlu1 %v90_v24 }
  0x22   :  { %82 = vadd.xlane.f32.xlu0 %v81_v31 }
  0x23   :  { %85 = vadd.xlane.f32.xlu1 %v84_v30 }
  0x26   :  { %76 = vadd.xlane.f32.xlu0 %v75_v37 }
  0x27   :  { %79 = vadd.xlane.f32.xlu1 %v78_v36 }
  0x2a   :  { %70 = vadd.xlane.f32.xlu0 %v69_v44 }
  0x2b   :  { %73 = vadd.xlane.f32.xlu1 %v72_v43 }
  0x2e   :  { %64 = vadd.xlane.f32.xlu0 %v63_v48 }
  0x2f   :  { %67 = vadd.xlane.f32.xlu1 %v66_v47 }
  0x40   :  { %253 = vperm.xlu1 %357, %v248_v50  }
  0x44   :  { %250 = vperm.xlu0 %356, %v247_v49  }
  0x9b   :  { %v107_v52 = vpop.xlane.xlu0 %106 }
  0x9c   :  { %v101_v53 = vpop.xlane.xlu1 %100  ;;  %v125_v54 = vmax.f32 %v107_v52, 1e-24 }
  0x9d   :  { %v123_v56 = vmax.f32 %v101_v53, 1e-24 }
  0x9e   :  { %359 = vrsqrt.f32 %v125_v54 }
  0x9f   :  { %v110_v55 = vpop.xlane.xlu0 %109 }
  0xa0   :  { %v104_v57 = vpop.xlane.xlu1 %103  ;;  %v126_v58 = vmax.f32 %v110_v55, 1e-24 }
  0xa1   :  { %v124_v59 = vmax.f32 %v104_v57, 1e-24 }
  0xa2   :  { %361 = vrsqrt.f32 %v126_v58 }
  0xa3   :  { %363 = vrsqrt.f32 %v123_v56  ;;  %v95_v61 = vpop.xlane.xlu0 %94 }
  0xa4   :  { %v98_v60 = vpop.xlane.xlu1 %97  ;;  %365 = vrsqrt.f32 %v124_v59  ;;  %v121_v63 = vmax.f32 %v95_v61, 1e-24 }
  0xa5   :  { %v122_v62 = vmax.f32 %v98_v60, 1e-24 }
  0xa7   :  { %367 = vrsqrt.f32 %v122_v62  ;;  %v89_v4 = vpop.xlane.xlu0 %88 }
  0xa8   :  { %369 = vrsqrt.f32 %v121_v63  ;;  %v92_v3 = vpop.xlane.xlu1 %91  ;;  %v119_v10 = vmax.f32 %v89_v4, 1e-24 }
  0xa9   :  { %v120_v7 = vmax.f32 %v92_v3, 1e-24 }
  0xab   :  { %v360_v5 = vpop.eup %359  ;;  %371 = vrsqrt.f32 %v120_v7  ;;  %v83_v20 = vpop.xlane.xlu0 %82 }
  0xac   :  { %v157_v13 = vmul.f32 %v360_v5, %v474_v0  ;;  %373 = vrsqrt.f32 %v119_v10  ;;  %v86_v19 = vpop.xlane.xlu1 %85  ;;  %v117_v0 = vmax.f32 %v83_v20, 1e-24 }
  0xad   :  { %v118_v26 = vmax.f32 %v86_v19, 1e-24 }
  0xaf   :  { %v362_v11 = vpop.eup %361  ;;  %375 = vrsqrt.f32 %v118_v26  ;;  %v77_v36 = vpop.xlane.xlu0 %76 }
  0xb0   :  { %v364_v12 = vpop.eup %363  ;;  %v158_v14 = vmul.f32 %v362_v11, %v479_v1  ;;  %377 = vrsqrt.f32 %v117_v0  ;;  %v80_v33 = vpop.xlane.xlu1 %79  ;;  %v115_v39 = vmax.f32 %v77_v36, 1e-24 }
  0xb1   :  { %v366_v15 = vpop.eup %365  ;;  %v155_v24 = vmul.f32 %v364_v12, %v484_v2 }
  0xb2   :  { %v168_v18 = vpack.c.bf16 %v158_v14, %v157_v13  ;;  %v156_v25 = vmul.f32 %v366_v15, %v495_v6  ;;  %v116_v6 = vmax.f32 %v80_v33, 1e-24  ;;  %v242_v14 = vlaneseq }
  0xb3   :  { %v71_v45 = vpop.xlane.xlu0 %70 }
  0xb4   :  { %v199_v21 = vsel %vm62_vm0, %v168_v18, 0  ;;  %v368_v27 = vpop.eup %367  ;;  %v167_v1 = vpack.c.bf16 %v156_v25, %v155_v24  ;;  %379 = vrsqrt.f32 %v116_v6  ;;  %v74_v44 = vpop.xlane.xlu1 %73  ;;  %v113_v50 = vmax.f32 %v71_v45, 1e-24 }
  0xb5   :  { %328 = vmatpush3.bf16.xpose.msra.mxu0 %v199_v21  ;;  %v370_v30 = vpop.eup %369  ;;  %v154_v32 = vmul.f32 %v368_v27, %v502_v8  ;;  %381 = vrsqrt.f32 %v115_v39  ;;  %v114_v47 = vmax.f32 %v74_v44, 1e-24  ;;  %v243_v15 = vand.u32 127, %v242_v14 }
  0xb6   :  { %329 = vmatprep.subr.bf16.mxu0 %v442_v46  ;;  %v153_v31 = vmul.f32 %v370_v30, %v507_v9  ;;  %v196_v2 = vsel %vm62_vm0, %v167_v1, 0 }
  0xb7   :  { %383 = vrsqrt.f32 %v114_v47 }
  0xb8   :  { %v372_v37 = vpop.eup %371  ;;  %v166_v38 = vpack.c.bf16 %v154_v32, %v153_v31  ;;  %385 = vrsqrt.f32 %v113_v50  ;;  %v68_v54 = vpop.xlane.xlu1 %67 }
  0xb9   :  { %v374_v42 = vpop.eup %373  ;;  %v152_v8 = vmul.f32 %v372_v37, %v520_v16  ;;  %v65_v16 = vpop.xlane.xlu0 %64  ;;  %v112_v55 = vmax.f32 %v68_v54, 1e-24 }
  0xba   :  { %v193_v43 = vsel %vm62_vm0, %v166_v38, 0  ;;  %v151_v9 = vmul.f32 %v374_v42, %v525_v17  ;;  %v111_v58 = vmax.f32 %v65_v16, 1e-24 }
  0xbb   :  { %387 = vrsqrt.f32 %v112_v55 }
  0xbc   :  { %v376_v48 = vpop.eup %375  ;;  %v165_v49 = vpack.c.bf16 %v152_v8, %v151_v9  ;;  %389 = vrsqrt.f32 %v111_v58  ;;  %v254_v19 = vpop.permute.xlu1 %253 }
  0xbd   :  { %330 = vmatpush3.bf16.xpose.msra.mxu0 %v196_v2  ;;  %v378_v51 = vpop.eup %377  ;;  %v150_v17 = vmul.f32 %v376_v48, %v536_v22  ;;  %vm256_vm3 = vcmp.eq.s32.totalorder %v243_v15, %v254_v19 }
  0xbe   :  { %331 = vmatprep.subr.bf16.mxu0 %v442_v46  ;;  %v190_v52 = vsel %vm62_vm0, %v165_v49, 0  ;;  %v149_v53 = vmul.f32 %v378_v51, %v541_v23 }
  0xbf   :  { %v251_v18 = vpop.permute.xlu0 %250 }
  0xc0   :  { %v164_v57 = vpack.c.bf16 %v150_v17, %v149_v53  ;;  %vm255_vm2 = vcmp.eq.s32.totalorder %v243_v15, %v251_v18 }
  0xc1   :  { %v380_v56 = vpop.eup %379 }
  0xc2   :  { %v382_v59 = vpop.eup %381  ;;  %v187_v60 = vsel %vm62_vm0, %v164_v57, 0  ;;  %v148_v23 = vmul.f32 %v380_v56, %v552_v28 }
  0xc3   :  { %v147_v61 = vmul.f32 %v382_v59, %v557_v29 }
  0xc4   :  { %v384_v22 = vpop.eup %383 }
  0xc5   :  { %332 = vmatpush3.bf16.xpose.msra.mxu0 %v193_v43  ;;  %v163_v62 = vpack.c.bf16 %v148_v23, %v147_v61  ;;  %v386_v63 = vpop.eup %385  ;;  %v146_v5 = vmul.f32 %v384_v22, %v568_v34  ;;  %v358_v34 = vld [vmem:[#allocation2] sm:$0xff]  }
  0xc6   :  { %333 = vmatprep.subr.bf16.mxu0 %v442_v46  ;;  %v145_v4 = vmul.f32 %v386_v63, %v573_v35 }
  0xc7   :  { %v184_v3 = vsel %vm62_vm0, %v163_v62, 0 }
  0xc8   :  { %v388_v7 = vpop.eup %387  ;;  %v162_v10 = vpack.c.bf16 %v146_v5, %v145_v4 }
  0xc9   :  { %v390_v29 = vpop.eup %389  ;;  %v144_v12 = vmul.f32 %v388_v7, %v584_v40 }
  0xca   :  { %v181_v28 = vsel %vm62_vm0, %v162_v10, 0  ;;  %v143_v11 = vmul.f32 %v390_v29, %v589_v41 }
  0xcc   :  { %v161_v13 = vpack.c.bf16 %v144_v12, %v143_v11 }
  0xcd   :  { %334 = vmatpush3.bf16.xpose.msra.mxu0 %v190_v52 }
  0xce   :  { %335 = vmatprep.subr.bf16.mxu0 %v442_v46  ;;  %v178_v35 = vsel %vm62_vm0, %v161_v13, 0 }
  0xd5   :  { %336 = vmatpush3.bf16.xpose.msra.mxu0 %v187_v60 }
  0xd6   :  { %337 = vmatprep.subr.bf16.mxu0 %v442_v46 }
  0xdd   :  { %338 = vmatpush3.bf16.xpose.msra.mxu0 %v184_v3 }
  0xde   :  { %339 = vmatprep.subr.bf16.mxu0 %v442_v46 }
  0xe5   :  { %340 = vmatpush3.bf16.xpose.msra.mxu0 %v181_v28 }
  0xe6   :  { %341 = vmatprep.subr.bf16.mxu0 %v442_v46 }
  0xed   :  { %342 = vmatpush3.bf16.xpose.msra.mxu0 %v178_v35 }
  0xf4   :  { %344 = vmatmul.mubr.msk.bf16.vlgmr.msra.gmra.mxu0 %vm62_vm0, %v358_v34 }
 0x1b4   :  { %v235_v20 = vpop.f32.mrf.mxu0 }
 0x1b5   :  { %v257_v41 = vsel %vm255_vm2, %v235_v20, 0.0 }
 0x1b6   :  { %v345_v21 = vpop.f32.mrf.mxu0  ;;  %259 = vadd.xlane.f32.xlu1 %v257_v41 }
 0x1b8   :  { %v238_v40 = vpop.f32.mrf.mxu0 }
 0x1b9   :  { %v258_v46 = vsel %vm256_vm3, %v238_v40, 0.0 }
 0x1ba   :  { %261 = vadd.xlane.f32.xlu0 %v258_v46  ;;  %v346_v24 = vpop.f32.mrf.mxu0 }
 0x23f   :  { %v260_v25 = vpop.xlane.xlu1 %259 }
 0x240   :  { %v316_v26 = vclamps-f32 %v260_v25, 0.9999999 }
 0x242   :  { %v269_v27 = vmul.f32 %v316_v26, %v316_v26  ;;  %v267_v39 = vmul.f32 0.87758255, %v316_v26 }
 0x243   :  { %v262_v0 = vpop.xlane.xlu0 %261 }
 0x244   :  { %v271_v30 = vsub.f32 1.0, %v269_v27  ;;  %v317_v1 = vclamps-f32 %v262_v0, 0.9999999 }
 0x246   :  { %391 = vrsqrt.f32 %v271_v30  ;;  %v270_v31 = vmul.f32 %v317_v1, %v317_v1  ;;  %vm275_vm4 = vcmp.eq.f32.partialorder %v271_v30, inf  ;;  %v278_v2 = vand.u32 2147483648, %v271_v30 }
 0x247   :  { %vm277_vm5 = vcmp.eq.f32.partialorder %v271_v30, 0.0  ;;  %v268_v49 = vmul.f32 0.87758255, %v317_v1 }
 0x248   :  { %v272_v32 = vsub.f32 1.0, %v270_v31 }
 0x24a   :  { %393 = vrsqrt.f32 %v272_v32  ;;  %vm282_vm6 = vcmp.eq.f32.partialorder %v272_v32, inf  ;;  %v285_v8 = vand.u32 2147483648, %v272_v32  ;;  %vm284_vm7 = vcmp.eq.f32.partialorder %v272_v32, 0.0 }
 0x253   :  { %v392_v33 = vpop.eup %391 }
 0x254   :  { %v274_v36 = vmul.f32 %v392_v33, %v271_v30 }
 0x256   :  { %v276_v6 = vsel %vm275_vm4, %v271_v30, %v274_v36 }
 0x257   :  { %v279_v37 = vsel %vm277_vm5, %v278_v2, %v276_v6  ;;  %v394_v38 = vpop.eup %393 }
 0x258   :  { %v287_v42 = vmul.f32 0.47942555, %v279_v37  ;;  %v281_v43 = vmul.f32 %v394_v38, %v272_v32 }
 0x25a   :  { %v289_v9 = vsub.f32 %v267_v39, %v287_v42  ;;  %v283_v44 = vsel %vm282_vm6, %v272_v32, %v281_v43 }
 0x25b   :  { %v286_v47 = vsel %vm284_vm7, %v285_v8, %v283_v44 }
 0x25c   :  { %v291_v45 = vsel %vm255_vm2, %v289_v9, %v235_v20  ;;  %v288_v50 = vmul.f32 0.47942555, %v286_v47 }
 0x25d   :  { %v293_v48 = vmul.f32 30.0, %v291_v45 }
 0x25e   :  { %v290_v51 = vsub.f32 %v268_v49, %v288_v50 }
 0x25f   :  { %295 = vst [vmem:[#allocation5] sm:$0xff] %v293_v48 }
 0x260   :  { %v292_v52 = vsel %vm256_vm3, %v290_v51, %v238_v40 }
 0x261   :  { %v294_v53 = vmul.f32 30.0, %v292_v52 }
 0x263   :  { %296 = vst [vmem:[#allocation5 + $0x8] sm:$0xff] %v294_v53 }
 0x264   :  { %301 = vsyncadd [#allocation4], 224  ;;  %s445_s1 = smov [#allocation5]  }
 0x265   :  { %s302_s25 = sshll.u32 %s445_s1, 4  ;;  %s303_s25 = int_to_ptr.vmem [resolvable:$true] %s302_s25 }
 0x266   :  { %s415_s26 = scalar_lea.vmem %s303_s25, 32  ;;  %s419_s27 = scalar_lea.vmem %s303_s25, 256 }
 0x267   :  { %p416_p5 = scmp.ne.s32.totalorder %s303_s25, %s415_s26  ;;  %p420_p6 = scmp.lt.s32.totalorder %s303_s25, %s303_s25 }
 0x268   :  { %p421_p7 = scmp.lt.s32.totalorder %s419_s27, %s415_s26 }
 0x26a   :  { %p422_p8 = por %p421_p7, %p420_p6 }
 0x26c   :  { %p423_p9 = pnand %p422_p8, %p416_p5 }
 0x26e   :  { %426 = shalt.err (!%p423_p9)
}
 0x26f   :  { %s446_s28 = smov 32   ;;  %s447_s29 = smov 2  }
 0x270   :  { %308 = dma.vmem_to_hbm [thread:$0]  %s303_s25, 32, %s649_s3, [#allocation4], %s446_s28, %s446_s28, %s447_s29  }
 0x271   :  { %437 = dma.done.wait [#allocation4], 256  }
 0x272   :  { %438 = vsyncadd [#allocation4], 4294967040 }
 0x273   :  { %312 = vsyncpa [#allocation3], 1 }
 0x274   :  { %313 = vsyncpa [#allocation4], 1 }

</bundles_post_ra>
